<compile_context>
chip_gen: v5e
topology: v5e:2x2
jax: 0.10.0
libtpu: 0.0.40
codegen_flags: <defaults>
</compile_context>

<pallas_src>
import jax
import jax.numpy as jnp
from jax import lax
from jax.experimental import pallas as pl
from jax.experimental.pallas import tpu as pltpu


def _soft_q_kernel(s_ref, a_ref, w1s_ref, w1a_ref, b1_ref,
                   w2_ref, b2_ref, w3_ref, b3_ref, o_ref):
    # Layer 1: fused "concat" -> two MXU matmuls accumulated together.
    h1 = jnp.tanh(
        jnp.dot(s_ref[...], w1s_ref[...], preferred_element_type=jnp.float32)
        + jnp.dot(a_ref[...], w1a_ref[...], preferred_element_type=jnp.float32)
        + b1_ref[...]
    )
    # Layer 2.
    h2 = jnp.tanh(
        jnp.dot(h1, w2_ref[...], preferred_element_type=jnp.float32) + b2_ref[...]
    )
    # Layer 3, lane-dense: w3 is kept in PyTorch layout (1, H); contract the H
    # axis of both operands ((1, H) x (TM, H)^T -> (1, TM)) so the per-tile
    # result lands batch-on-lanes and the store is a full-width vst.
    q = lax.dot_general(
        w3_ref[...], h2,
        dimension_numbers=(((1,), (1,)), ((), ())),
        preferred_element_type=jnp.float32,
    ) + b3_ref[...]
    o_ref[...] = q.astype(o_ref.dtype)


def soft_q_forward(state, action, params, *, block_batch=None):
    """state: (B, num_inputs), action: (B, num_actions) -> (B, 1)."""
    w1s, w1a, b1, w2, b2, w3, b3 = params
    batch, num_inputs = state.shape
    num_actions = action.shape[1]

    # Batch tile: one tile for small batches, 512-row tiles otherwise.
    if block_batch is None:
        block_batch = batch if batch <= 512 else 512
    tm = min(block_batch, batch)
    # Lane-dense (1, tm) output block must be 128-aligned unless it covers the
    # whole batch; activation blocks need tm % 8 == 0 unless tm == batch.
    assert (tm % 128 == 0) or (tm == batch), (
        "block_batch must be a multiple of 128 or equal to the batch size")
    num_tiles = pl.cdiv(batch, tm)

    # Weights/biases are tiny: keep them VMEM-resident across the whole grid
    # via a constant index_map (no re-DMA per batch tile).
    resident = lambda arr: pl.BlockSpec(arr.shape, lambda i: (0, 0))

    out = pl.pallas_call(
        _soft_q_kernel,
        out_shape=jax.ShapeDtypeStruct((1, batch), jnp.float32),
        grid=(num_tiles,),
        in_specs=[
            pl.BlockSpec((tm, num_inputs), lambda i: (i, 0)),   # state tile
            pl.BlockSpec((tm, num_actions), lambda i: (i, 0)),  # action tile
            resident(w1s),
            resident(w1a),
            resident(b1),
            resident(w2),
            resident(b2),
            resident(w3),
            resident(b3),
        ],
        out_specs=pl.BlockSpec((1, tm), lambda i: (0, i)),
        compiler_params=pltpu.CompilerParams(
            dimension_semantics=("parallel",),
        ),
    )(state, action, w1s, w1a, b1, w2, b2, w3, b3)

    # (1, B) lane-dense slab -> (B, 1) column (tiny, free reshape outside kernel).
    return out.reshape(batch, 1)


def init_soft_q_params(key, num_inputs, num_actions, hidden_size, init_w=0.003):
    """Deterministic init mirroring PyTorch defaults.

    nn.Linear default: U(-1/sqrt(fan_in), 1/sqrt(fan_in)) for weight and bias.
    linear3 is overridden to U(-init_w, init_w) as in the module __init__.
    W1 is stored split (state part / action part), each as (in, hidden) for
    x @ W.  W3 is stored in PyTorch layout (1, hidden) for the lane-dense
    transposed contraction.
    """
    k1a, k1b, k2, k3, k4, k5, k6 = jax.random.split(key, 7)
    d_in = num_inputs + num_actions

    def uniform(k, shape, bound):
        return jax.random.uniform(k, shape, jnp.float32, -bound, bound)

    bnd1 = 1.0 / jnp.sqrt(d_in)
    bnd2 = 1.0 / jnp.sqrt(hidden_size)

    w1s = uniform(k1a, (num_inputs, hidden_size), bnd1)
    w1a = uniform(k1b, (num_actions, hidden_size), bnd1)
    b1 = uniform(k2, (1, hidden_size), bnd1)
    w2 = uniform(k3, (hidden_size, hidden_size), bnd2)
    b2 = uniform(k4, (1, hidden_size), bnd2)
    w3 = uniform(k5, (1, hidden_size), init_w)   # PyTorch layout (out, in)
    b3 = uniform(k6, (1, 1), init_w)
    return (w1s, w1a, b1, w2, b2, w3, b3)


def soft_q_ref(state, action, params):
    """Pure-JAX reference matching the PyTorch module (concat + 3 linears)."""
    w1s, w1a, b1, w2, b2, w3, b3 = params
    x = jnp.concatenate([state, action], axis=1)
    w1 = jnp.concatenate([w1s, w1a], axis=0)
    h1 = jnp.tanh(x @ w1 + b1)
    h2 = jnp.tanh(h1 @ w2 + b2)
    return h2 @ w3.T + b3


if __name__ == "__main__":
    key = jax.random.PRNGKey(0)
    k_params, k_state, k_action = jax.random.split(key, 3)

    batch = 256
    num_inputs = 16
    num_actions = 8
    hidden_size = 32

    params = init_soft_q_params(k_params, num_inputs, num_actions, hidden_size)
    state = jax.random.normal(k_state, (batch, num_inputs), jnp.float32)
    action = jax.random.normal(k_action, (batch, num_actions), jnp.float32)

    # block_batch=128 -> grid=(2,): exercises the pipelined / parallel path.
    q = soft_q_forward(state, action, params, block_batch=128)
    q = jax.block_until_ready(q)

    q_ref = soft_q_ref(state, action, params)
    assert q.shape == (batch, 1), q.shape
    assert jnp.allclose(q, q_ref, atol=1e-5, rtol=1e-5), (q, q_ref)

    # Also exercise the single-tile (tm == batch) path used for small batches.
    q_small = jax.block_until_ready(soft_q_forward(state[:64], action[:64], params))
    assert jnp.allclose(q_small, soft_q_ref(state[:64], action[:64], params),
                        atol=1e-5, rtol=1e-5)

    print("KERNEL_OK")
</pallas_src>

<mosaic_0001>
module attributes {stable_mosaic.version = 11 : i64} {
  func.func @_soft_q_kernel(%arg0: i32, %arg1: memref<128x16xf32, #tpu.memory_space<vmem>>, %arg2: memref<128x8xf32, #tpu.memory_space<vmem>>, %arg3: memref<16x32xf32, #tpu.memory_space<vmem>>, %arg4: memref<8x32xf32, #tpu.memory_space<vmem>>, %arg5: memref<1x32xf32, #tpu.memory_space<vmem>>, %arg6: memref<32x32xf32, #tpu.memory_space<vmem>>, %arg7: memref<1x32xf32, #tpu.memory_space<vmem>>, %arg8: memref<1x32xf32, #tpu.memory_space<vmem>>, %arg9: memref<1x1xf32, #tpu.memory_space<vmem>>, %arg10: memref<1x128xf32, #tpu.memory_space<vmem>>) attributes {dimension_semantics = [#tpu.dimension_semantics<parallel>], iteration_bounds = array<i64: 2>, scalar_prefetch = 0 : i64, scratch_operands = 0 : i64, tpu.core_type = #tpu.core_type<tc>, window_params = [{transform_indices = @transform_0, window_bounds = array<i64: 128, 16>}, {transform_indices = @transform_1, window_bounds = array<i64: 128, 8>}, {pipeline_mode = #tpu.pipeline_mode<synchronous>, transform_indices = @transform_2, window_bounds = array<i64: 16, 32>}, {pipeline_mode = #tpu.pipeline_mode<synchronous>, transform_indices = @transform_3, window_bounds = array<i64: 8, 32>}, {pipeline_mode = #tpu.pipeline_mode<synchronous>, transform_indices = @transform_4, window_bounds = array<i64: 1, 32>}, {pipeline_mode = #tpu.pipeline_mode<synchronous>, transform_indices = @transform_5, window_bounds = array<i64: 32, 32>}, {pipeline_mode = #tpu.pipeline_mode<synchronous>, transform_indices = @transform_6, window_bounds = array<i64: 1, 32>}, {pipeline_mode = #tpu.pipeline_mode<synchronous>, transform_indices = @transform_7, window_bounds = array<i64: 1, 32>}, {pipeline_mode = #tpu.pipeline_mode<synchronous>, transform_indices = @transform_8, window_bounds = array<i64: 1, 1>}, {transform_indices = @transform_9, window_bounds = array<i64: 1, 128>}]} {
    %c0 = arith.constant 0 : index
    %c0_0 = arith.constant 0 : index
    %0 = vector.load %arg1[%c0, %c0_0] : memref<128x16xf32, #tpu.memory_space<vmem>>, vector<128x16xf32>
    %c0_1 = arith.constant 0 : index
    %c0_2 = arith.constant 0 : index
    %1 = vector.load %arg3[%c0_1, %c0_2] : memref<16x32xf32, #tpu.memory_space<vmem>>, vector<16x32xf32>
    %cst = arith.constant dense<0.000000e+00> : vector<128x32xf32>
    %2 = tpu.matmul %0, %1, %cst {dimension_numbers = #tpu.dot_dimension_numbers<[1], [0], [0], [1], [0, 0, 1, 1], [], []>} : vector<128x16xf32>, vector<16x32xf32>, vector<128x32xf32> -> vector<128x32xf32>
    %c0_3 = arith.constant 0 : index
    %c0_4 = arith.constant 0 : index
    %3 = vector.load %arg2[%c0_3, %c0_4] : memref<128x8xf32, #tpu.memory_space<vmem>>, vector<128x8xf32>
    %c0_5 = arith.constant 0 : index
    %c0_6 = arith.constant 0 : index
    %4 = vector.load %arg4[%c0_5, %c0_6] : memref<8x32xf32, #tpu.memory_space<vmem>>, vector<8x32xf32>
    %cst_7 = arith.constant dense<0.000000e+00> : vector<128x32xf32>
    %5 = tpu.matmul %3, %4, %cst_7 {dimension_numbers = #tpu.dot_dimension_numbers<[1], [0], [0], [1], [0, 0, 1, 1], [], []>} : vector<128x8xf32>, vector<8x32xf32>, vector<128x32xf32> -> vector<128x32xf32>
    %6 = arith.addf %2, %5 : vector<128x32xf32>
    %c0_8 = arith.constant 0 : index
    %c0_9 = arith.constant 0 : index
    %7 = vector.load %arg5[%c0_8, %c0_9] : memref<1x32xf32, #tpu.memory_space<vmem>>, vector<1x32xf32>
    %8 = vector.broadcast %7 : vector<1x32xf32> to vector<128x32xf32>
    %9 = arith.addf %6, %8 : vector<128x32xf32>
    %10 = math.tanh %9 : vector<128x32xf32>
    %c0_10 = arith.constant 0 : index
    %c0_11 = arith.constant 0 : index
    %11 = vector.load %arg6[%c0_10, %c0_11] : memref<32x32xf32, #tpu.memory_space<vmem>>, vector<32x32xf32>
    %cst_12 = arith.constant dense<0.000000e+00> : vector<128x32xf32>
    %12 = tpu.matmul %10, %11, %cst_12 {dimension_numbers = #tpu.dot_dimension_numbers<[1], [0], [0], [1], [0, 0, 1, 1], [], []>} : vector<128x32xf32>, vector<32x32xf32>, vector<128x32xf32> -> vector<128x32xf32>
    %c0_13 = arith.constant 0 : index
    %c0_14 = arith.constant 0 : index
    %13 = vector.load %arg7[%c0_13, %c0_14] : memref<1x32xf32, #tpu.memory_space<vmem>>, vector<1x32xf32>
    %14 = vector.broadcast %13 : vector<1x32xf32> to vector<128x32xf32>
    %15 = arith.addf %12, %14 : vector<128x32xf32>
    %16 = math.tanh %15 : vector<128x32xf32>
    %c0_15 = arith.constant 0 : index
    %c0_16 = arith.constant 0 : index
    %17 = vector.load %arg8[%c0_15, %c0_16] : memref<1x32xf32, #tpu.memory_space<vmem>>, vector<1x32xf32>
    %cst_17 = arith.constant dense<0.000000e+00> : vector<1x128xf32>
    %18 = tpu.matmul %17, %16, %cst_17 {dimension_numbers = #tpu.dot_dimension_numbers<[1], [1], [0], [0], [0, 0, 1, 0], [], []>} : vector<1x32xf32>, vector<128x32xf32>, vector<1x128xf32> -> vector<1x128xf32>
    %c0_18 = arith.constant 0 : index
    %c0_19 = arith.constant 0 : index
    %19 = vector.load %arg9[%c0_18, %c0_19] : memref<1x1xf32, #tpu.memory_space<vmem>>, vector<1x1xf32>
    %20 = vector.broadcast %19 : vector<1x1xf32> to vector<1x128xf32>
    %21 = arith.addf %18, %20 : vector<1x128xf32>
    %c0_20 = arith.constant 0 : index
    %c0_21 = arith.constant 0 : index
    %22 = vector.load %arg10[%c0_20, %c0_21] : memref<1x128xf32, #tpu.memory_space<vmem>>, vector<1x128xf32>
    tpu.vector_store %arg10[%c0_20, %c0_21], %21 {strides = array<i32>} : memref<1x128xf32, #tpu.memory_space<vmem>>, vector<1x128xf32>,
    return
  }
  func.func @transform_0(%arg0: i32) -> (i32, i32) {
    %c0_i32 = arith.constant 0 : i32
    %c0_i32_0 = arith.constant 0 : i32
    return %arg0, %c0_i32 : i32, i32
  }
  func.func @transform_1(%arg0: i32) -> (i32, i32) {
    %c0_i32 = arith.constant 0 : i32
    %c0_i32_0 = arith.constant 0 : i32
    return %arg0, %c0_i32 : i32, i32
  }
  func.func @transform_2(%arg0: i32) -> (i32, i32) {
    %c0_i32 = arith.constant 0 : i32
    %c0_i32_0 = arith.constant 0 : i32
    %c0_i32_1 = arith.constant 0 : i32
    return %c0_i32, %c0_i32_0 : i32, i32
  }
  func.func @transform_3(%arg0: i32) -> (i32, i32) {
    %c0_i32 = arith.constant 0 : i32
    %c0_i32_0 = arith.constant 0 : i32
    %c0_i32_1 = arith.constant 0 : i32
    return %c0_i32, %c0_i32_0 : i32, i32
  }
  func.func @transform_4(%arg0: i32) -> (i32, i32) {
    %c0_i32 = arith.constant 0 : i32
    %c0_i32_0 = arith.constant 0 : i32
    %c0_i32_1 = arith.constant 0 : i32
    return %c0_i32, %c0_i32_0 : i32, i32
  }
  func.func @transform_5(%arg0: i32) -> (i32, i32) {
    %c0_i32 = arith.constant 0 : i32
    %c0_i32_0 = arith.constant 0 : i32
    %c0_i32_1 = arith.constant 0 : i32
    return %c0_i32, %c0_i32_0 : i32, i32
  }
  func.func @transform_6(%arg0: i32) -> (i32, i32) {
    %c0_i32 = arith.constant 0 : i32
    %c0_i32_0 = arith.constant 0 : i32
    %c0_i32_1 = arith.constant 0 : i32
    return %c0_i32, %c0_i32_0 : i32, i32
  }
  func.func @transform_7(%arg0: i32) -> (i32, i32) {
    %c0_i32 = arith.constant 0 : i32
    %c0_i32_0 = arith.constant 0 : i32
    %c0_i32_1 = arith.constant 0 : i32
    return %c0_i32, %c0_i32_0 : i32, i32
  }
  func.func @transform_8(%arg0: i32) -> (i32, i32) {
    %c0_i32 = arith.constant 0 : i32
    %c0_i32_0 = arith.constant 0 : i32
    %c0_i32_1 = arith.constant 0 : i32
    return %c0_i32, %c0_i32_0 : i32, i32
  }
  func.func @transform_9(%arg0: i32) -> (i32, i32) {
    %c0_i32 = arith.constant 0 : i32
    %c0_i32_0 = arith.constant 0 : i32
    return %c0_i32, %arg0 : i32, i32
  }
}

</mosaic_0001>

<bundles_post_ra>
// kernel: tpu_custom_call.1
= control target key start
LH: loop header
LB: loop body
LE: loop exit
PB: predicated region body
PF: predicated region fallthrough
CT: control target
= control target key end

     0   :  { %s1498_s0 = inlined_call_operand.vmem [shape: f32[256,16], index: 0, kind: input, shape index: {}]   ;;  %s1499_s1 = inlined_call_operand.vmem [shape: f32[256,8], index: 1, kind: input, shape index: {}]   ;;  %s1500_s2 = inlined_call_operand.vmem [shape: f32[16,32], index: 2, kind: input, shape index: {}]   ;;  %s1501_s3 = inlined_call_operand.vmem [shape: f32[8,32], index: 3, kind: input, shape index: {}]   ;;  %s1502_s4 = inlined_call_operand.vmem [shape: f32[1,32], index: 4, kind: input, shape index: {}]   ;;  %s1503_s5 = inlined_call_operand.vmem [shape: f32[32,32], index: 5, kind: input, shape index: {}]   ;;  %s1504_s6 = inlined_call_operand.vmem [shape: f32[1,32], index: 6, kind: input, shape index: {}]   ;;  %s1505_s7 = inlined_call_operand.vmem [shape: f32[1,32], index: 7, kind: input, shape index: {}]   ;;  %s1506_s8 = inlined_call_operand.<no memory space> [shape: f32[1,1], index: 8, kind: input, shape index: {}]   ;;  %s1507_s9 = inlined_call_operand.hbm [shape: f32[1,256], index: 9, kind: output, shape index: {}]  }
   0x1   :  { %v14_v0 = vstv %s1506_s8 }
   0x2   :  { %15 = vst [vmem:[#allocation2] sm:$0x1] %v14_v0 }
   0x3   :  { %16 = vsyncpa [#allocation4], 0 }
   0x4   :  { %18 = vsyncpa [#allocation4 + $0x1], 0  ;;  %s1253_s11 = smov 0   ;;  %s1255_s12 = smov 0  }
   0x5   :  { %s1257_s13 = smov 0   ;;  %s1259_s14 = smov 0  }
   0x6 LB: > { %s1274_s8 = sadd.s32 4294967295, %s1197_s14   ;;  %s953_s15 = sadd.s32 4294967294, %s1197_s14   ;;  %s1197_s14 = sphi %s1259_s14, %s1513_s14   ;;  %s1193_s13 = sphi %s1257_s13, %s1512_s13   ;;  %s1189_s12 = sphi %s1255_s12, %s1511_s12   ;;  %s1185_s11 = sphi %s1253_s11, %s1510_s11  }
   0x7   : > { %s1278_s16 = sadd.s32 1, %s1197_s14   ;;  %s230_s17 = sadd.s32 1, %s1193_s13 }
   0x8   : > { %s227_s18 = ssub.s32 %s1197_s14, %s1278_s16  ;;  %p240_p0 = scmp.ne.s32.totalorder %s1193_s13, %s1189_s12 }
   0x9   : > { %p228_p1 = scmp.eq.s32.totalorder %s227_s18, 0  ;;  %p241_p2 = scmp.eq.s32.totalorder %s1274_s8, 1 }
   0xa   : > { %p246_p3 = scmp.ne.s32.totalorder %s1189_s12, %s1185_s11  ;;  %p247_p4 = scmp.eq.s32.totalorder %s953_s15, 1 }
   0xb   : > { %s1289_s19 = scalar_select %p228_p1, %s1193_s13, %s230_s17  }
   0xc   : > { %p1291_p5 = por %p241_p2, %p240_p0  ;;  %p1295_p6 = por %p247_p4, %p246_p3 }
   0xd   : > { %p956_p7 = scmp.ge.s32.totalorder %s1197_s14, 1  ;;  %p304_p8 = scmp.lt.s32.totalorder %s1197_s14, 3 }
   0xf   : > { %p305_p9 = pnand %p956_p7, %p304_p8 }
  0x10   : > { %s957_s28 = sshll.u32 (!%p305_p9), %s1274_s8, 4  ;;  %s342_s24 = sand.u32 (!%p305_p9), 1, %s1189_s12  }
  0x11   : > { %308 = sbr.rel (%p305_p9) target bundleno = 625 (0x271), region = 56  ;;  %p345_p10 = scmp.lt.s32.totalorder (!%p305_p9), %s957_s28, 31 }
  0x12   : > { %s882_s27 = scalar_lea.hbm (!%p305_p9), %s1507_s9, %s1274_s8  ;;  %s874_s10 = scalar_lea.sflag (!%p305_p9), [#allocation4], %s342_s24 }
  0x13   : > { %s886_s30 = sshll.u32 (!%p305_p9), %s882_s27, 4  ;;  %s1155_s8 = scalar_lea.hbm (!%p305_p9), %s1507_s9, 2  ;;  %s887_s30 = int_to_ptr.hbm [resolvable:$true] %s886_s30 }
  0x14   : > { %s1149_s17 = sshra.s32 (!%p305_p9), %s887_s30, 4  ;;  %s1150_s17 = int_to_ptr.hbm [resolvable:$true] %s1149_s17 }
  0x15   : > { %p1156_p0 = scmp.lt.s32.totalorder (!%p305_p9), %s1150_s17, %s1507_s9 }
  0x16   : > { %v373_v1 = vld [vmem:[%s1500_s2 + $0x8] sm:$0xff]  ;;  %v390_v2 = vld [vmem:[%s1501_s3] sm:$0xff]  ;;  %s1515_s28 = smov (!%p345_p10, %s957_s28), 31  ;;  %vm391_vm0 = vcmask 64512   ;;  %vm505_vm1 = vcmask 130048   ;;  %v658_v30 = vld [vmem:[%s1503_s5 + $0x18] sm:$0xff] }
  0x17   : > { %v372_v3 = vld [vmem:[%s1500_s2] sm:$0xff]  ;;  %568 = vmatpush.msra.mxu1 %v373_v1  ;;  %455 = vmatpush.msra.mxu0 %v390_v2  ;;  %s958_s29 = sshll.u32 %s1515_s28, 3  ;;  %v657_v31 = vld [vmem:[%s1503_s5 + $0x10] sm:$0xff]  ;;  %v656_v34 = vld [vmem:[%s1503_s5 + $0x8] sm:$0xff]  ;;  %vm663_vm2 = vcmask 261120   ;;  %s343_s28 = scalar_lea.vmem [#allocation3], %s342_s24 }
  0x18   : > { %s1314_s15 = scalar_lea.vmem %s1499_s1, %s958_s29  ;;  %s1319_s22 = scalar_lea.vmem %s1498_s0, %s958_s29  ;;  %724 = vmatpush.msra.mxu2 %v658_v30  ;;  %v655_v35 = vld [vmem:[%s1503_s5] sm:$0xff] }
  0x19   : > { %569 = vmatpush.msra.mxu1 %v372_v3  ;;  %v374_v4 = vld [vmem:[%s1314_s15] sm:$0xff]  ;;  %v375_v6 = vld [vmem:[%s1314_s15 + $0x8] sm:$0xff]  ;;  %v376_v8 = vld [vmem:[%s1314_s15 + $0x10] sm:$0xff]  ;;  %s884_s29 = sshll.u32 %s343_s28, 4  ;;  %s885_s29 = int_to_ptr.vmem [resolvable:$true] %s884_s29 }
  0x1a   : > { %v356_v5 = vld [vmem:[%s1319_s22] sm:$0xff]  ;;  %961 = vmatmul.msk.f32.vlgmr.msra.gmra.mxu0 %vm391_vm0, %v374_v4  ;;  %v357_v7 = vld [vmem:[%s1319_s22 + $0x8] sm:$0xff]  ;;  %v358_v9 = vld [vmem:[%s1319_s22 + $0x10] sm:$0xff]  ;;  %725 = vmatpush.msra.mxu2 %v657_v31 }
  0x1b   : > { %977 = vmatmul.msk.f32.vlgmr.msra.gmra.mxu1 %vm505_vm1, %v356_v5  ;;  %v377_v10 = vld [vmem:[%s1314_s15 + $0x18] sm:$0xff]  ;;  %v378_v12 = vld [vmem:[%s1314_s15 + $0x20] sm:$0xff]  ;;  %v379_v14 = vld [vmem:[%s1314_s15 + $0x28] sm:$0xff] }
  0x1c   : > { %v359_v11 = vld [vmem:[%s1319_s22 + $0x18] sm:$0xff]  ;;  %v360_v13 = vld [vmem:[%s1319_s22 + $0x20] sm:$0xff]  ;;  %v361_v15 = vld [vmem:[%s1319_s22 + $0x28] sm:$0xff]  ;;  %726 = vmatpush.msra.mxu2 %v656_v34 }
  0x1d   : > { %v380_v16 = vld [vmem:[%s1314_s15 + $0x30] sm:$0xff]  ;;  %v381_v18 = vld [vmem:[%s1314_s15 + $0x38] sm:$0xff]  ;;  %v382_v20 = vld [vmem:[%s1314_s15 + $0x40] sm:$0xff] }
  0x1e   : > { %v362_v17 = vld [vmem:[%s1319_s22 + $0x30] sm:$0xff]  ;;  %v363_v19 = vld [vmem:[%s1319_s22 + $0x38] sm:$0xff]  ;;  %v364_v21 = vld [vmem:[%s1319_s22 + $0x40] sm:$0xff]  ;;  %727 = vmatpush.msra.mxu2 %v655_v35 }
  0x1f   : > { %v383_v22 = vld [vmem:[%s1314_s15 + $0x48] sm:$0xff]  ;;  %v384_v24 = vld [vmem:[%s1314_s15 + $0x50] sm:$0xff]  ;;  %v385_v26 = vld [vmem:[%s1314_s15 + $0x58] sm:$0xff] }
  0x20   : > { %v365_v23 = vld [vmem:[%s1319_s22 + $0x48] sm:$0xff]  ;;  %v366_v25 = vld [vmem:[%s1319_s22 + $0x50] sm:$0xff]  ;;  %v367_v27 = vld [vmem:[%s1319_s22 + $0x58] sm:$0xff] }
  0x21   : > { %v386_v28 = vld [vmem:[%s1314_s15 + $0x60] sm:$0xff]  ;;  %v387_v32 = vld [vmem:[%s1314_s15 + $0x68] sm:$0xff]  ;;  %v388_v36 = vld [vmem:[%s1314_s15 + $0x70] sm:$0xff] }
  0x22   : > { %962 = vmatmul.msk.f32.gmra.mxu0 %vm391_vm0, %v375_v6  ;;  %v368_v29 = vld [vmem:[%s1319_s22 + $0x60] sm:$0xff]  ;;  %v369_v33 = vld [vmem:[%s1319_s22 + $0x68] sm:$0xff]  ;;  %v370_v37 = vld [vmem:[%s1319_s22 + $0x70] sm:$0xff] }
  0x23   : > { %978 = vmatmul.msk.f32.gmra.mxu1 %vm505_vm1, %v357_v7  ;;  %v389_v38 = vld [vmem:[%s1314_s15 + $0x78] sm:$0xff]  ;;  %v1400_v40 = vld [vmem:[%s1502_s4] ss:$0 sm:$0xff]  ;;  %s1151_s15 = scalar_lea.hbm %s1150_s17, 1 }
  0x24   : > { %v371_v39 = vld [vmem:[%s1319_s22 + $0x78] sm:$0xff]  ;;  %p1152_p11 = scmp.ne.s32.totalorder %s1150_s17, %s1151_s15  ;;  %p1157_p1 = scmp.lt.s32.totalorder %s1155_s8, %s1151_s15 }
  0x26   : > { %p1153_p12 = pnand %p1152_p11, %p1291_p5  ;;  %p1158_p2 = por %p1157_p1, %p1156_p0 }
  0x28   : > { %p1154_p13 = pneg %p1153_p12 }
  0x2a   : > { %963 = vmatmul.msk.f32.gmra.mxu0 %vm391_vm0, %v376_v8  ;;  %p1159_p3 = pnand %p1158_p2, %p1154_p13 }
  0x2b   : > { %979 = vmatmul.msk.f32.gmra.mxu1 %vm505_vm1, %v358_v9 }
  0x32   : > { %964 = vmatmul.msk.f32.gmra.mxu0 %vm391_vm0, %v377_v10 }
  0x33   : > { %980 = vmatmul.msk.f32.gmra.mxu1 %vm505_vm1, %v359_v11 }
  0x3a   : > { %965 = vmatmul.msk.f32.gmra.mxu0 %vm391_vm0, %v378_v12 }
  0x3b   : > { %981 = vmatmul.msk.f32.gmra.mxu1 %vm505_vm1, %v360_v13 }
  0x42   : > { %966 = vmatmul.msk.f32.gmra.mxu0 %vm391_vm0, %v379_v14 }
  0x43   : > { %982 = vmatmul.msk.f32.gmra.mxu1 %vm505_vm1, %v361_v15 }
  0x4a   : > { %967 = vmatmul.msk.f32.gmra.mxu0 %vm391_vm0, %v380_v16 }
  0x4b   : > { %983 = vmatmul.msk.f32.gmra.mxu1 %vm505_vm1, %v362_v17 }
  0x52   : > { %968 = vmatmul.msk.f32.gmra.mxu0 %vm391_vm0, %v381_v18 }
  0x53   : > { %984 = vmatmul.msk.f32.gmra.mxu1 %vm505_vm1, %v363_v19 }
  0x5a   : > { %969 = vmatmul.msk.f32.gmra.mxu0 %vm391_vm0, %v382_v20 }
  0x5b   : > { %985 = vmatmul.msk.f32.gmra.mxu1 %vm505_vm1, %v364_v21 }
  0x62   : > { %970 = vmatmul.msk.f32.gmra.mxu0 %vm391_vm0, %v383_v22 }
  0x63   : > { %986 = vmatmul.msk.f32.gmra.mxu1 %vm505_vm1, %v365_v23 }
  0x6a   : > { %971 = vmatmul.msk.f32.gmra.mxu0 %vm391_vm0, %v384_v24 }
  0x6b   : > { %987 = vmatmul.msk.f32.gmra.mxu1 %vm505_vm1, %v366_v25 }
  0x72   : > { %972 = vmatmul.msk.f32.gmra.mxu0 %vm391_vm0, %v385_v26 }
  0x73   : > { %988 = vmatmul.msk.f32.gmra.mxu1 %vm505_vm1, %v367_v27 }
  0x7a   : > { %973 = vmatmul.msk.f32.gmra.mxu0 %vm391_vm0, %v386_v28 }
  0x7b   : > { %989 = vmatmul.msk.f32.gmra.mxu1 %vm505_vm1, %v368_v29 }
  0x82   : > { %974 = vmatmul.msk.f32.gmra.mxu0 %vm391_vm0, %v387_v32 }
  0x83   : > { %990 = vmatmul.msk.f32.gmra.mxu1 %vm505_vm1, %v369_v33 }
  0x8a   : > { %975 = vmatmul.msk.f32.gmra.mxu0 %vm391_vm0, %v388_v36 }
  0x8b   : > { %991 = vmatmul.msk.f32.gmra.mxu1 %vm505_vm1, %v370_v37 }
  0x92   : > { %976 = vmatmul.msk.f32.gmra.mxu0 %vm391_vm0, %v389_v38 }
  0x93   : > { %992 = vmatmul.msk.f32.gmra.mxu1 %vm505_vm1, %v371_v39 }
  0x97   : > { %v457_v41 = vpop.f32.mrf.mxu0 }
  0x98   : > { %v571_v42 = vpop.f32.mrf.mxu1 }
  0x99   : > { %v572_v43 = vadd.f32 %v571_v42, %v457_v41 }
  0x9b   : > { %v623_v44 = vadd.f32 %v1400_v40, %v572_v43 }
  0x9d   : > { %1071 = vtanh.f32 %v623_v44 }
  0x9f   : > { %v460_v45 = vpop.f32.mrf.mxu0 }
  0xa0   : > { %v574_v46 = vpop.f32.mrf.mxu1 }
  0xa1   : > { %v575_v47 = vadd.f32 %v574_v46, %v460_v45 }
  0xa3   : > { %v1072_v48 = vpop.eup %1071  ;;  %v624_v49 = vadd.f32 %v1400_v40, %v575_v47 }
  0xa4   : > { %993 = vmatmul.msk.f32.vlgmr.msra.gmra.mxu2 %vm663_vm2, %v1072_v48 }
  0xa5   : > { %1073 = vtanh.f32 %v624_v49 }
  0xa7   : > { %v463_v50 = vpop.f32.mrf.mxu0 }
  0xa8   : > { %v577_v51 = vpop.f32.mrf.mxu1 }
  0xa9   : > { %v578_v52 = vadd.f32 %v577_v51, %v463_v50 }
  0xab   : > { %v1074_v53 = vpop.eup %1073  ;;  %v625_v54 = vadd.f32 %v1400_v40, %v578_v52 }
  0xac   : > { %994 = vmatmul.msk.f32.gmra.mxu2 %vm663_vm2, %v1074_v53 }
  0xad   : > { %1075 = vtanh.f32 %v625_v54 }
  0xaf   : > { %v466_v55 = vpop.f32.mrf.mxu0 }
  0xb0   : > { %v580_v56 = vpop.f32.mrf.mxu1 }
  0xb1   : > { %v581_v57 = vadd.f32 %v580_v56, %v466_v55 }
  0xb3   : > { %v1076_v58 = vpop.eup %1075  ;;  %v626_v59 = vadd.f32 %v1400_v40, %v581_v57 }
  0xb4   : > { %995 = vmatmul.msk.f32.gmra.mxu2 %vm663_vm2, %v1076_v58 }
  0xb5   : > { %1077 = vtanh.f32 %v626_v59 }
  0xb7   : > { %v469_v60 = vpop.f32.mrf.mxu0 }
  0xb8   : > { %v583_v61 = vpop.f32.mrf.mxu1 }
  0xb9   : > { %v584_v62 = vadd.f32 %v583_v61, %v469_v60 }
  0xbb   : > { %v1078_v63 = vpop.eup %1077  ;;  %v627_v0 = vadd.f32 %v1400_v40, %v584_v62 }
  0xbc   : > { %996 = vmatmul.msk.f32.gmra.mxu2 %vm663_vm2, %v1078_v63 }
  0xbd   : > { %1079 = vtanh.f32 %v627_v0 }
  0xbf   : > { %v472_v1 = vpop.f32.mrf.mxu0 }
  0xc0   : > { %v586_v2 = vpop.f32.mrf.mxu1 }
  0xc1   : > { %v587_v3 = vadd.f32 %v586_v2, %v472_v1 }
  0xc3   : > { %v1080_v4 = vpop.eup %1079  ;;  %v628_v5 = vadd.f32 %v1400_v40, %v587_v3 }
  0xc4   : > { %997 = vmatmul.msk.f32.gmra.mxu2 %vm663_vm2, %v1080_v4 }
  0xc5   : > { %1081 = vtanh.f32 %v628_v5 }
  0xc7   : > { %v475_v6 = vpop.f32.mrf.mxu0 }
  0xc8   : > { %v589_v7 = vpop.f32.mrf.mxu1 }
  0xc9   : > { %v590_v8 = vadd.f32 %v589_v7, %v475_v6 }
  0xcb   : > { %v1082_v9 = vpop.eup %1081  ;;  %v629_v10 = vadd.f32 %v1400_v40, %v590_v8  ;;  %v1070_v8 = vld [vmem:[%s1504_s6] ss:$0 sm:$0xff] }
  0xcc   : > { %998 = vmatmul.msk.f32.gmra.mxu2 %vm663_vm2, %v1082_v9 }
  0xcd   : > { %1083 = vtanh.f32 %v629_v10 }
  0xcf   : > { %v478_v11 = vpop.f32.mrf.mxu0 }
  0xd0   : > { %v592_v12 = vpop.f32.mrf.mxu1 }
  0xd1   : > { %v593_v13 = vadd.f32 %v592_v12, %v478_v11 }
  0xd3   : > { %v1084_v14 = vpop.eup %1083  ;;  %v630_v15 = vadd.f32 %v1400_v40, %v593_v13 }
  0xd4   : > { %999 = vmatmul.msk.f32.gmra.mxu2 %vm663_vm2, %v1084_v14 }
  0xd5   : > { %1085 = vtanh.f32 %v630_v15 }
  0xd7   : > { %v481_v16 = vpop.f32.mrf.mxu0 }
  0xd8   : > { %v595_v17 = vpop.f32.mrf.mxu1 }
  0xd9   : > { %v596_v18 = vadd.f32 %v595_v17, %v481_v16 }
  0xdb   : > { %v1086_v19 = vpop.eup %1085  ;;  %v631_v20 = vadd.f32 %v1400_v40, %v596_v18 }
  0xdc   : > { %1000 = vmatmul.msk.f32.gmra.mxu2 %vm663_vm2, %v1086_v19 }
  0xdd   : > { %1087 = vtanh.f32 %v631_v20 }
  0xdf   : > { %v484_v21 = vpop.f32.mrf.mxu0 }
  0xe0   : > { %v598_v22 = vpop.f32.mrf.mxu1 }
  0xe1   : > { %v599_v23 = vadd.f32 %v598_v22, %v484_v21 }
  0xe3   : > { %v1088_v24 = vpop.eup %1087  ;;  %v632_v25 = vadd.f32 %v1400_v40, %v599_v23 }
  0xe4   : > { %1001 = vmatmul.msk.f32.gmra.mxu2 %vm663_vm2, %v1088_v24 }
  0xe5   : > { %1089 = vtanh.f32 %v632_v25 }
  0xe7   : > { %v487_v26 = vpop.f32.mrf.mxu0 }
  0xe8   : > { %v601_v27 = vpop.f32.mrf.mxu1 }
  0xe9   : > { %v602_v28 = vadd.f32 %v601_v27, %v487_v26 }
  0xeb   : > { %v1090_v29 = vpop.eup %1089  ;;  %v633_v30 = vadd.f32 %v1400_v40, %v602_v28 }
  0xec   : > { %1002 = vmatmul.msk.f32.gmra.mxu2 %vm663_vm2, %v1090_v29 }
  0xed   : > { %1091 = vtanh.f32 %v633_v30  ;;  %v794_v30 = vld [vmem:[#allocation2] sm:$0x1] }
  0xef   : > { %v490_v31 = vpop.f32.mrf.mxu0 }
  0xf0   : > { %v604_v32 = vpop.f32.mrf.mxu1 }
  0xf1   : > { %v605_v33 = vadd.f32 %v604_v32, %v490_v31  ;;  %v1199_v31 = vmov 0  }
  0xf2   : > { %1068 = vset.pattern.permute.xlu0 %v1199_v31 }
  0xf3   : > { %v1092_v34 = vpop.eup %1091  ;;  %v634_v35 = vadd.f32 %v1400_v40, %v605_v33  ;;  %797 = vperm.xlu0 %1068, %v794_v30  }
  0xf4   : > { %1003 = vmatmul.msk.f32.gmra.mxu2 %vm663_vm2, %v1092_v34 }
  0xf5   : > { %1093 = vtanh.f32 %v634_v35 }
  0xf7   : > { %v493_v36 = vpop.f32.mrf.mxu0 }
  0xf8   : > { %v607_v37 = vpop.f32.mrf.mxu1 }
  0xf9   : > { %v608_v38 = vadd.f32 %v607_v37, %v493_v36 }
  0xfb   : > { %v1094_v39 = vpop.eup %1093  ;;  %v635_v41 = vadd.f32 %v1400_v40, %v608_v38 }
  0xfc   : > { %1004 = vmatmul.msk.f32.gmra.mxu2 %vm663_vm2, %v1094_v39 }
  0xfd   : > { %1095 = vtanh.f32 %v635_v41 }
  0xff   : > { %v496_v42 = vpop.f32.mrf.mxu0 }
 0x100   : > { %v610_v43 = vpop.f32.mrf.mxu1 }
 0x101   : > { %v611_v44 = vadd.f32 %v610_v43, %v496_v42 }
 0x103   : > { %v1096_v45 = vpop.eup %1095  ;;  %v636_v46 = vadd.f32 %v1400_v40, %v611_v44 }
 0x104   : > { %1005 = vmatmul.msk.f32.gmra.mxu2 %vm663_vm2, %v1096_v45  ;;  %v793_v45 = vld [vmem:[%s1505_s7] sm:$0x1] }
 0x105   : > { %1097 = vtanh.f32 %v636_v46 }
 0x107   : > { %v499_v47 = vpop.f32.mrf.mxu0 }
 0x108   : > { %v613_v48 = vpop.f32.mrf.mxu1 }
 0x109   : > { %v614_v49 = vadd.f32 %v613_v48, %v499_v47 }
 0x10b   : > { %v1098_v50 = vpop.eup %1097  ;;  %v637_v51 = vadd.f32 %v1400_v40, %v614_v49 }
 0x10c   : > { %1006 = vmatmul.msk.f32.gmra.mxu2 %vm663_vm2, %v1098_v50 }
 0x10d   : > { %1099 = vtanh.f32 %v637_v51 }
 0x10f   : > { %v502_v52 = vpop.f32.mrf.mxu0 }
 0x110   : > { %v616_v53 = vpop.f32.mrf.mxu1 }
 0x111   : > { %v617_v54 = vadd.f32 %v616_v53, %v502_v52 }
 0x113   : > { %v1100_v55 = vpop.eup %1099  ;;  %v638_v56 = vadd.f32 %v1400_v40, %v617_v54 }
 0x114   : > { %1007 = vmatmul.msk.f32.gmra.mxu2 %vm663_vm2, %v1100_v55 }
 0x115   : > { %1101 = vtanh.f32 %v638_v56 }
 0x11b   : > { %v1102_v57 = vpop.eup %1101 }
 0x11c   : > { %1008 = vmatmul.msk.f32.gmra.mxu2 %vm663_vm2, %v1102_v57 }
 0x127   : > { %v1434_v58 = vpop.f32.mrf.mxu2 }
 0x128   : > { %v730_v41 = vadd.f32 %v1070_v8, %v1434_v58 }
 0x12f   : > { %v1436_v59 = vpop.f32.mrf.mxu2 }
 0x130   : > { %v733_v38 = vadd.f32 %v1070_v8, %v1436_v59 }
 0x137   : > { %v1438_v60 = vpop.f32.mrf.mxu2 }
 0x138   : > { %v736_v36 = vadd.f32 %v1070_v8, %v1438_v60 }
 0x13f   : > { %v738_v61 = vpop.f32.mrf.mxu2 }
 0x140   : > { %v739_v34 = vadd.f32 %v1070_v8, %v738_v61 }
 0x147   : > { %v741_v62 = vpop.f32.mrf.mxu2 }
 0x148   : > { %v742_v32 = vadd.f32 %v1070_v8, %v741_v62 }
 0x14f   : > { %v744_v63 = vpop.f32.mrf.mxu2 }
 0x150   : > { %v745_v28 = vadd.f32 %v1070_v8, %v744_v63 }
 0x157   : > { %v747_v0 = vpop.f32.mrf.mxu2 }
 0x158   : > { %v748_v26 = vadd.f32 %v1070_v8, %v747_v0 }
 0x15f   : > { %v750_v1 = vpop.f32.mrf.mxu2 }
 0x160   : > { %v751_v24 = vadd.f32 %v1070_v8, %v750_v1 }
 0x165   : > { %v798_v46 = vpop.permute.xlu0 %797 }
 0x166   : > { %v800_v47 = vperm.slane %v798_v46, 0 }
 0x167   : > { %v753_v2 = vpop.f32.mrf.mxu2 }
 0x168   : > { %v754_v22 = vadd.f32 %v1070_v8, %v753_v2 }
 0x16f   : > { %v756_v3 = vpop.f32.mrf.mxu2 }
 0x170   : > { %v757_v20 = vadd.f32 %v1070_v8, %v756_v3 }
 0x177   : > { %v759_v40 = vpop.f32.mrf.mxu2 }
 0x178   : > { %v760_v18 = vadd.f32 %v1070_v8, %v759_v40 }
 0x17f   : > { %v762_v4 = vpop.f32.mrf.mxu2 }
 0x180   : > { %v763_v16 = vadd.f32 %v1070_v8, %v762_v4 }
 0x187   : > { %v765_v5 = vpop.f32.mrf.mxu2 }
 0x188   : > { %v766_v14 = vadd.f32 %v1070_v8, %v765_v5 }
 0x18f   : > { %v768_v6 = vpop.f32.mrf.mxu2 }
 0x190   : > { %v769_v12 = vadd.f32 %v1070_v8, %v768_v6 }
 0x197   : > { %v771_v7 = vpop.f32.mrf.mxu2 }
 0x198   : > { %v772_v11 = vadd.f32 %v1070_v8, %v771_v7 }
 0x19f   : > { %v774_v9 = vpop.f32.mrf.mxu2 }
 0x1a0   : > { %v775_v10 = vadd.f32 %v1070_v8, %v774_v9 }
 0x1a2   : > { %1103 = vtanh.f32 %v775_v10 }
 0x1a3   : > { %1105 = vtanh.f32 %v772_v11 }
 0x1a4   : > { %1107 = vtanh.f32 %v769_v12 }
 0x1a5   : > { %1109 = vtanh.f32 %v766_v14 }
 0x1a6   : > { %1111 = vtanh.f32 %v763_v16 }
 0x1a7   : > { %1113 = vtanh.f32 %v760_v18 }
 0x1a8   : > { %v1104_v13 = vpop.eup %1103  ;;  %1115 = vtanh.f32 %v757_v20 }
 0x1a9   : > { %1009 = vmatpush.xpose.msk.msra.mxu3 %vm663_vm2, %v1104_v13  ;;  %v1106_v15 = vpop.eup %1105  ;;  %1117 = vtanh.f32 %v754_v22 }
 0x1aa   : > { %v1108_v17 = vpop.eup %1107  ;;  %1119 = vtanh.f32 %v751_v24 }
 0x1ab   : > { %v1110_v19 = vpop.eup %1109  ;;  %1121 = vtanh.f32 %v748_v26 }
 0x1ac   : > { %v1112_v21 = vpop.eup %1111  ;;  %1123 = vtanh.f32 %v745_v28 }
 0x1ad   : > { %1010 = vmatpush.xpose.msk.msra.mxu3 %vm663_vm2, %v1106_v15  ;;  %v1114_v23 = vpop.eup %1113  ;;  %1125 = vtanh.f32 %v742_v32 }
 0x1ae   : > { %v1116_v25 = vpop.eup %1115  ;;  %1127 = vtanh.f32 %v739_v34 }
 0x1af   : > { %v1118_v27 = vpop.eup %1117  ;;  %1129 = vtanh.f32 %v736_v36 }
 0x1b0   : > { %v1120_v29 = vpop.eup %1119  ;;  %1131 = vtanh.f32 %v733_v38 }
 0x1b1   : > { %1011 = vmatpush.xpose.msk.msra.mxu3 %vm663_vm2, %v1108_v17  ;;  %v1122_v33 = vpop.eup %1121  ;;  %1133 = vtanh.f32 %v730_v41 }
 0x1b2   : > { %v1124_v35 = vpop.eup %1123 }
 0x1b3   : > { %v1126_v37 = vpop.eup %1125 }
 0x1b4   : > { %v1128_v39 = vpop.eup %1127 }
 0x1b5   : > { %1012 = vmatpush.xpose.msk.msra.mxu3 %vm663_vm2, %v1110_v19  ;;  %v1130_v42 = vpop.eup %1129 }
 0x1b6   : > { %v1132_v43 = vpop.eup %1131 }
 0x1b7   : > { %v1134_v44 = vpop.eup %1133 }
 0x1b9   : > { %1013 = vmatpush.xpose.msk.msra.mxu3 %vm663_vm2, %v1112_v21 }
 0x1bd   : > { %1014 = vmatpush.xpose.msk.msra.mxu3 %vm663_vm2, %v1114_v23 }
 0x1c1   : > { %1015 = vmatpush.xpose.msk.msra.mxu3 %vm663_vm2, %v1116_v25 }
 0x1c5   : > { %1016 = vmatpush.xpose.msk.msra.mxu3 %vm663_vm2, %v1118_v27 }
 0x1c9   : > { %1017 = vmatpush.xpose.msk.msra.mxu3 %vm663_vm2, %v1120_v29 }
 0x1cd   : > { %1018 = vmatpush.xpose.msk.msra.mxu3 %vm663_vm2, %v1122_v33 }
 0x1d1   : > { %1019 = vmatpush.xpose.msk.msra.mxu3 %vm663_vm2, %v1124_v35 }
 0x1d5   : > { %1020 = vmatpush.xpose.msk.msra.mxu3 %vm663_vm2, %v1126_v37 }
 0x1d9   : > { %1021 = vmatpush.xpose.msk.msra.mxu3 %vm663_vm2, %v1128_v39 }
 0x1dd   : > { %1022 = vmatpush.xpose.msk.msra.mxu3 %vm663_vm2, %v1130_v42 }
 0x1e1   : > { %1023 = vmatpush.xpose.msk.msra.mxu3 %vm663_vm2, %v1132_v43 }
 0x1e5   : > { %1024 = vmatpush.xpose.msk.msra.mxu3 %vm663_vm2, %v1134_v44 }
 0x1e8   : > { %1025 = vmatmul.msk.f32.vlgmr.msra.gmra.mxu3 %vm663_vm2, %v793_v45 }
 0x26b   : > { %v869_v48 = vpop.f32.mrf.mxu3 }
 0x26c   : > { %v870_v49 = vadd.f32 %v869_v48, %v800_v47 }
 0x26e   : > { %872 = vst [vmem:[%s343_s28] sm:$0x1] %v870_v49 }
 0x26f   : > { %1162 = shalt.err (!%p1159_p3)
}
 0x270   : > { %1028 = dma.vmem_to_hbm [thread:$0]  (%p1291_p5), %s885_s29, 16, %s887_s30, %s874_s10  }
 0x271 PF: > { %p1034_p4 = scmp.ge.s32.totalorder %s1197_s14, 2  ;;  %s898_s24 = sand.u32 1, %s1185_s11  }
 0x272   : > { %s899_s26 = scalar_lea.sflag [#allocation4], %s898_s24 }
 0x273   : > { %p1031_p7 = pnand %p1034_p4, %p1295_p6 }
 0x275   : > { %p1032_p8 = pneg %p1031_p7 }
 0x277   : > { %1180 = dma.done.wait (%p1032_p8), %s899_s26, 16  }
 0x278   : > { %1182 = vsyncadd (%p1032_p8), %s899_s26, 4294967280  ;;  %p21_p9 = scmp.ge.s32.totalorder %s1278_s16, 4   ;;  %s1510_s11 = smov %s1189_s12 }
 0x279   : > { %s1511_s12 = smov %s1193_s13  ;;  %s1512_s13 = smov %s1289_s19 }
 0x27a   : > { %s1513_s14 = smov %s1278_s16  ;;  %23 = sbr.rel (!%p21_p9) target bundleno = 6 (0x6), region = 94 }
 0x27f   :  { %904 = vsyncpa [#allocation4], 1 }
 0x280   :  { %906 = vsyncpa [#allocation4 + $0x1], 1 }

</bundles_post_ra>
